<compile_context>
chip_gen: v6e
topology: v6e:2x2x1
jax: 0.10.0
libtpu: 0.0.40
codegen_flags: <defaults>
</compile_context>

<pallas_src>
import jax
import jax.numpy as jnp
from jax.experimental import pallas as pl
from jax.experimental.pallas import tpu as pltpu


def _policy_kernel(x_ref, w1_ref, b1_ref, w2_ref, b2_ref, out_ref):
    """Batch-on-lanes layout:
       x_ref  : (num_inputs, TB)      one column per state, batch on the lane axis
       w1_ref : (hidden, num_inputs)  PyTorch nn.Linear layout (out, in)
       b1_ref : (hidden, 1)
       w2_ref : (num_actions, hidden)
       b2_ref : (num_actions, 1)
       out_ref: (num_actions, TB)
    """
    x = x_ref[...]                                  # (NI, TB)
    w1 = w1_ref[...]                                # (H, NI)
    b1 = b1_ref[...]                                # (H, 1)
    ni = x.shape[0]

    # ----- layer 1: h = relu(W1 @ x + b1) ------------------------------------
    # Contraction depth is tiny (num_inputs = 4): an MXU dot would be pure
    # push/pop latency, so unroll as NI broadcast-FMAs on full-lane vregs.
    if ni <= 8:
        h = b1 + w1[:, 0:1] * x[0:1, :]
        for k in range(1, ni):
            h = h + w1[:, k:k + 1] * x[k:k + 1, :]
    else:
        h = jnp.dot(w1, x, preferred_element_type=jnp.float32) + b1
    h = jnp.maximum(h, 0.0)                         # (H, TB)

    # ----- layer 2: logits = W2 @ h + b2  (MXU, lane-dense N = TB) ------------
    logits = jnp.dot(w2_ref[...], h, preferred_element_type=jnp.float32) + b2_ref[...]

    num_actions = out_ref.shape[0]
    if num_actions == 2:
        # 2-class softmax == sigmoid of the logit difference; stable exp(-|d|)
        # form (never overflows) + EUP approx reciprocal + one Newton step.
        d = logits[1:2, :] - logits[0:1, :]         # (1, TB)
        z = jnp.exp(-jnp.abs(d))                    # in (0, 1]
        denom = 1.0 + z
        r = pl.reciprocal(denom, approx=True)
        r = r * (2.0 - denom * r)                   # Newton step -> ~f32 accuracy
        p_hi = r                                    # prob of the larger logit
        p_lo = z * r                                # prob of the smaller logit
        pos = d >= 0.0
        out_ref[0:1, :] = jnp.where(pos, p_lo, p_hi).astype(out_ref.dtype)  # P(a=0)
        out_ref[1:2, :] = jnp.where(pos, p_hi, p_lo).astype(out_ref.dtype)  # P(a=1)
    else:
        # General numerically-stable softmax over the action (sublane) axis.
        m = jnp.max(logits, axis=0, keepdims=True)
        e = jnp.exp(logits - m)
        denom = jnp.sum(e, axis=0, keepdims=True)
        r = pl.reciprocal(denom, approx=True)
        r = r * (2.0 - denom * r)
        out_ref[...] = (e * r).astype(out_ref.dtype)


def policy_forward(state, w1, b1, w2, b2, *, max_tile=2048):
    """state: (B, num_inputs) f32.
       w1: (hidden, num_inputs), b1: (hidden,), w2: (num_actions, hidden),
       b2: (num_actions,)  -- native nn.Linear layouts.
       Returns softmax probabilities of shape (B, num_actions)."""
    B, num_inputs = state.shape
    hidden = w1.shape[0]
    num_actions = w2.shape[0]

    # Batch-on-lanes: one column per state; biases as columns.
    xT = state.T                                    # (num_inputs, B)
    b1c = b1.reshape(hidden, 1)
    b2c = b2.reshape(num_actions, 1)

    # Tile selection: a single full-batch tile for typical rollouts (no padding,
    # one grid step).  Only very large batches get split into >=2 lane-aligned
    # tiles so v7x's second TensorCore can take a share of the "parallel" axis.
    if B <= max_tile:
        tb = B
    else:
        n_tiles = max(2, pl.cdiv(B, max_tile))
        tb = ((pl.cdiv(B, n_tiles) + 127) // 128) * 128   # multiple of 128, <= max_tile
    b_pad = pl.cdiv(B, tb) * tb
    if b_pad != B:
        xT = jnp.pad(xT, ((0, 0), (0, b_pad - B)))
    grid = (b_pad // tb,)

    out = pl.pallas_call(
        _policy_kernel,
        out_shape=jax.ShapeDtypeStruct((num_actions, b_pad), jnp.float32),
        grid=grid,
        in_specs=[
            # states: a new lane-tile of the batch per grid step.
            pl.BlockSpec((num_inputs, tb), lambda i: (0, i)),
            # parameters: constant block index -> stay VMEM-resident across grid.
            pl.BlockSpec((hidden, num_inputs), lambda i: (0, 0)),
            pl.BlockSpec((hidden, 1), lambda i: (0, 0)),
            pl.BlockSpec((num_actions, hidden), lambda i: (0, 0)),
            pl.BlockSpec((num_actions, 1), lambda i: (0, 0)),
        ],
        out_specs=pl.BlockSpec((num_actions, tb), lambda i: (0, i)),
        compiler_params=pltpu.CompilerParams(
            dimension_semantics=("parallel",),
        ),
    )(xT, w1, b1c, w2, b2c)

    return out[:, :B].T                             # back to (B, num_actions)


def init_params(key, num_inputs, num_actions, hidden_size):
    """Deterministic init with nn.Linear layouts: W (out_features, in_features), b (out_features,)."""
    k1, k2, k3, k4 = jax.random.split(key, 4)
    bound1 = 1.0 / jnp.sqrt(num_inputs)
    bound2 = 1.0 / jnp.sqrt(hidden_size)
    w1 = jax.random.uniform(k1, (hidden_size, num_inputs), jnp.float32, -bound1, bound1)
    b1 = jax.random.uniform(k2, (hidden_size,), jnp.float32, -bound1, bound1)
    w2 = jax.random.uniform(k3, (num_actions, hidden_size), jnp.float32, -bound2, bound2)
    b2 = jax.random.uniform(k4, (num_actions,), jnp.float32, -bound2, bound2)
    return w1, b1, w2, b2


def _reference(state, w1, b1, w2, b2):
    h = jnp.maximum(state @ w1.T + b1, 0.0)
    return jax.nn.softmax(h @ w2.T + b2, axis=1)


if __name__ == "__main__":
    # Inverted-pendulum sizes: state dim 4, 2 actions, hidden 32.
    num_inputs, num_actions, hidden_size = 4, 2, 32

    key = jax.random.PRNGKey(0)
    k_state, k_small, k_big, k_params = jax.random.split(key, 4)
    w1, b1, w2, b2 = init_params(k_params, num_inputs, num_actions, hidden_size)

    # Rollout-sized batch: single full-batch tile, no padding, grid=(1,).
    B = 256
    state = jax.random.normal(k_state, (B, num_inputs), jnp.float32)
    probs = jax.block_until_ready(policy_forward(state, w1, b1, w2, b2))
    ref = _reference(state, w1, b1, w2, b2)
    assert probs.shape == (B, num_actions), "bad output shape"
    assert jnp.allclose(probs, ref, atol=1e-5, rtol=1e-5), "mismatch vs reference (batched)"
    assert jnp.allclose(jnp.sum(probs, axis=1), 1.0, atol=1e-5), "rows must sum to 1"

    # Single-step-sized batch (B=2) -- the module's get_action path.
    state_small = jax.random.normal(k_small, (2, num_inputs), jnp.float32)
    probs_small = jax.block_until_ready(policy_forward(state_small, w1, b1, w2, b2))
    ref_small = _reference(state_small, w1, b1, w2, b2)
    assert probs_small.shape == (2, num_actions), "bad small output shape"
    assert jnp.allclose(probs_small, ref_small, atol=1e-5, rtol=1e-5), "mismatch vs reference (small)"

    # Large batch: exercises the multi-tile grid + lane-padding path.
    Bl = 3000
    state_big = jax.random.normal(k_big, (Bl, num_inputs), jnp.float32)
    probs_big = jax.block_until_ready(policy_forward(state_big, w1, b1, w2, b2))
    ref_big = _reference(state_big, w1, b1, w2, b2)
    assert probs_big.shape == (Bl, num_actions), "bad large output shape"
    assert jnp.allclose(probs_big, ref_big, atol=1e-5, rtol=1e-5), "mismatch vs reference (large)"

    print("KERNEL_OK")
</pallas_src>

<mosaic_0001>
module attributes {stable_mosaic.version = 11 : i64} {
  func.func @_policy_kernel(%arg0: i32, %arg1: memref<4x256xf32, #tpu.memory_space<vmem>>, %arg2: memref<32x4xf32, #tpu.memory_space<vmem>>, %arg3: memref<32x1xf32, #tpu.memory_space<vmem>>, %arg4: memref<2x32xf32, #tpu.memory_space<vmem>>, %arg5: memref<2x1xf32, #tpu.memory_space<vmem>>, %arg6: memref<2x256xf32, #tpu.memory_space<vmem>>) attributes {dimension_semantics = [#tpu.dimension_semantics<parallel>], iteration_bounds = array<i64: 1>, scalar_prefetch = 0 : i64, scratch_operands = 0 : i64, tpu.core_type = #tpu.core_type<tc>, window_params = [{transform_indices = @transform_0, window_bounds = array<i64: 4, 256>}, {pipeline_mode = #tpu.pipeline_mode<synchronous>, transform_indices = @transform_1, window_bounds = array<i64: 32, 4>}, {pipeline_mode = #tpu.pipeline_mode<synchronous>, transform_indices = @transform_2, window_bounds = array<i64: 32, 1>}, {pipeline_mode = #tpu.pipeline_mode<synchronous>, transform_indices = @transform_3, window_bounds = array<i64: 2, 32>}, {pipeline_mode = #tpu.pipeline_mode<synchronous>, transform_indices = @transform_4, window_bounds = array<i64: 2, 1>}, {transform_indices = @transform_5, window_bounds = array<i64: 2, 256>}]} {
    %c0 = arith.constant 0 : index
    %c0_0 = arith.constant 0 : index
    %0 = vector.load %arg1[%c0, %c0_0] : memref<4x256xf32, #tpu.memory_space<vmem>>, vector<4x256xf32>
    %c0_1 = arith.constant 0 : index
    %c0_2 = arith.constant 0 : index
    %1 = vector.load %arg2[%c0_1, %c0_2] : memref<32x4xf32, #tpu.memory_space<vmem>>, vector<32x4xf32>
    %c0_3 = arith.constant 0 : index
    %c0_4 = arith.constant 0 : index
    %2 = vector.load %arg3[%c0_3, %c0_4] : memref<32x1xf32, #tpu.memory_space<vmem>>, vector<32x1xf32>
    %3 = vector.extract_strided_slice %1 {offsets = [0, 0], sizes = [32, 1], strides = [1, 1]} : vector<32x4xf32> to vector<32x1xf32>
    %4 = vector.extract_strided_slice %0 {offsets = [0, 0], sizes = [1, 256], strides = [1, 1]} : vector<4x256xf32> to vector<1x256xf32>
    %5 = vector.broadcast %3 : vector<32x1xf32> to vector<32x256xf32>
    %6 = vector.broadcast %4 : vector<1x256xf32> to vector<32x256xf32>
    %7 = arith.mulf %5, %6 : vector<32x256xf32>
    %8 = vector.broadcast %2 : vector<32x1xf32> to vector<32x256xf32>
    %9 = arith.addf %8, %7 : vector<32x256xf32>
    %10 = vector.extract_strided_slice %1 {offsets = [0, 1], sizes = [32, 1], strides = [1, 1]} : vector<32x4xf32> to vector<32x1xf32>
    %11 = vector.extract_strided_slice %0 {offsets = [1, 0], sizes = [1, 256], strides = [1, 1]} : vector<4x256xf32> to vector<1x256xf32>
    %12 = vector.broadcast %10 : vector<32x1xf32> to vector<32x256xf32>
    %13 = vector.broadcast %11 : vector<1x256xf32> to vector<32x256xf32>
    %14 = arith.mulf %12, %13 : vector<32x256xf32>
    %15 = arith.addf %9, %14 : vector<32x256xf32>
    %16 = vector.extract_strided_slice %1 {offsets = [0, 2], sizes = [32, 1], strides = [1, 1]} : vector<32x4xf32> to vector<32x1xf32>
    %17 = vector.extract_strided_slice %0 {offsets = [2, 0], sizes = [1, 256], strides = [1, 1]} : vector<4x256xf32> to vector<1x256xf32>
    %18 = vector.broadcast %16 : vector<32x1xf32> to vector<32x256xf32>
    %19 = vector.broadcast %17 : vector<1x256xf32> to vector<32x256xf32>
    %20 = arith.mulf %18, %19 : vector<32x256xf32>
    %21 = arith.addf %15, %20 : vector<32x256xf32>
    %22 = vector.extract_strided_slice %1 {offsets = [0, 3], sizes = [32, 1], strides = [1, 1]} : vector<32x4xf32> to vector<32x1xf32>
    %23 = vector.extract_strided_slice %0 {offsets = [3, 0], sizes = [1, 256], strides = [1, 1]} : vector<4x256xf32> to vector<1x256xf32>
    %24 = vector.broadcast %22 : vector<32x1xf32> to vector<32x256xf32>
    %25 = vector.broadcast %23 : vector<1x256xf32> to vector<32x256xf32>
    %26 = arith.mulf %24, %25 : vector<32x256xf32>
    %27 = arith.addf %21, %26 : vector<32x256xf32>
    %cst = arith.constant 0.000000e+00 : f32
    %28 = vector.broadcast %cst : f32 to vector<32x256xf32>
    %29 = arith.maximumf %27, %28 : vector<32x256xf32>
    %c0_5 = arith.constant 0 : index
    %c0_6 = arith.constant 0 : index
    %30 = vector.load %arg4[%c0_5, %c0_6] : memref<2x32xf32, #tpu.memory_space<vmem>>, vector<2x32xf32>
    %cst_7 = arith.constant dense<0.000000e+00> : vector<2x256xf32>
    %31 = tpu.matmul %30, %29, %cst_7 {dimension_numbers = #tpu.dot_dimension_numbers<[1], [0], [0], [1], [0, 0, 1, 1], [], []>} : vector<2x32xf32>, vector<32x256xf32>, vector<2x256xf32> -> vector<2x256xf32>
    %c0_8 = arith.constant 0 : index
    %c0_9 = arith.constant 0 : index
    %32 = vector.load %arg5[%c0_8, %c0_9] : memref<2x1xf32, #tpu.memory_space<vmem>>, vector<2x1xf32>
    %33 = vector.broadcast %32 : vector<2x1xf32> to vector<2x256xf32>
    %34 = arith.addf %31, %33 : vector<2x256xf32>
    %35 = vector.extract_strided_slice %34 {offsets = [1, 0], sizes = [1, 256], strides = [1, 1]} : vector<2x256xf32> to vector<1x256xf32>
    %36 = vector.extract_strided_slice %34 {offsets = [0, 0], sizes = [1, 256], strides = [1, 1]} : vector<2x256xf32> to vector<1x256xf32>
    %37 = arith.subf %35, %36 : vector<1x256xf32>
    %38 = math.absf %37 : vector<1x256xf32>
    %cst_10 = arith.constant 0.000000e+00 : f32
    %39 = vector.broadcast %cst_10 : f32 to vector<1x256xf32>
    %40 = arith.subf %39, %38 : vector<1x256xf32>
    %41 = math.exp %40 : vector<1x256xf32>
    %cst_11 = arith.constant 1.000000e+00 : f32
    %42 = vector.broadcast %cst_11 : f32 to vector<1x256xf32>
    %43 = arith.addf %42, %41 : vector<1x256xf32>
    %44 = tpu.reciprocal %43 {approx = true} : vector<1x256xf32> -> vector<1x256xf32>
    %45 = arith.mulf %43, %44 : vector<1x256xf32>
    %cst_12 = arith.constant 2.000000e+00 : f32
    %46 = vector.broadcast %cst_12 : f32 to vector<1x256xf32>
    %47 = arith.subf %46, %45 : vector<1x256xf32>
    %48 = arith.mulf %44, %47 : vector<1x256xf32>
    %49 = arith.mulf %41, %48 : vector<1x256xf32>
    %cst_13 = arith.constant 0.000000e+00 : f32
    %50 = vector.broadcast %cst_13 : f32 to vector<1x256xf32>
    %51 = arith.cmpf oge, %37, %50 : vector<1x256xf32>
    %52 = arith.select %51, %49, %48 : vector<1x256xi1>, vector<1x256xf32>
    %c0_14 = arith.constant 0 : index
    %c0_15 = arith.constant 0 : index
    %53 = vector.load %arg6[%c0_14, %c0_15] : memref<2x256xf32, #tpu.memory_space<vmem>>, vector<1x256xf32>
    tpu.vector_store %arg6[%c0_14, %c0_15], %52 {strides = array<i32>} : memref<2x256xf32, #tpu.memory_space<vmem>>, vector<1x256xf32>,
    %54 = arith.select %51, %48, %49 : vector<1x256xi1>, vector<1x256xf32>
    %c1 = arith.constant 1 : index
    %c0_16 = arith.constant 0 : index
    %55 = vector.load %arg6[%c1, %c0_16] : memref<2x256xf32, #tpu.memory_space<vmem>>, vector<1x256xf32>
    tpu.vector_store %arg6[%c1, %c0_16], %54 {strides = array<i32>} : memref<2x256xf32, #tpu.memory_space<vmem>>, vector<1x256xf32>,
    return
  }
  func.func @transform_0(%arg0: i32) -> (i32, i32) {
    %c0_i32 = arith.constant 0 : i32
    %c0_i32_0 = arith.constant 0 : i32
    return %c0_i32, %arg0 : i32, i32
  }
  func.func @transform_1(%arg0: i32) -> (i32, i32) {
    %c0_i32 = arith.constant 0 : i32
    %c0_i32_0 = arith.constant 0 : i32
    %c0_i32_1 = arith.constant 0 : i32
    return %c0_i32, %c0_i32_0 : i32, i32
  }
  func.func @transform_2(%arg0: i32) -> (i32, i32) {
    %c0_i32 = arith.constant 0 : i32
    %c0_i32_0 = arith.constant 0 : i32
    %c0_i32_1 = arith.constant 0 : i32
    return %c0_i32, %c0_i32_0 : i32, i32
  }
  func.func @transform_3(%arg0: i32) -> (i32, i32) {
    %c0_i32 = arith.constant 0 : i32
    %c0_i32_0 = arith.constant 0 : i32
    %c0_i32_1 = arith.constant 0 : i32
    return %c0_i32, %c0_i32_0 : i32, i32
  }
  func.func @transform_4(%arg0: i32) -> (i32, i32) {
    %c0_i32 = arith.constant 0 : i32
    %c0_i32_0 = arith.constant 0 : i32
    %c0_i32_1 = arith.constant 0 : i32
    return %c0_i32, %c0_i32_0 : i32, i32
  }
  func.func @transform_5(%arg0: i32) -> (i32, i32) {
    %c0_i32 = arith.constant 0 : i32
    %c0_i32_0 = arith.constant 0 : i32
    return %c0_i32, %arg0 : i32, i32
  }
}

</mosaic_0001>

<bundles_post_ra>
// kernel: tpu_custom_call.1
= control target key start
LH: loop header
LB: loop body
LE: loop exit
PB: predicated region body
PF: predicated region fallthrough
CT: control target
= control target key end

     0   :  { %v494_v2 = vmov 1   ;;  %v495_v3 = vmov 0   ;;  %s632_s0 = inlined_call_operand.vmem [shape: f32[4,256], index: 0, kind: input, shape index: {}]   ;;  %s633_s1 = inlined_call_operand.vmem [shape: f32[32,4], index: 1, kind: input, shape index: {}]   ;;  %s634_s2 = inlined_call_operand.vmem [shape: f32[32,1], index: 2, kind: input, shape index: {}]   ;;  %s635_s3 = inlined_call_operand.vmem [shape: f32[2,32], index: 3, kind: input, shape index: {}]   ;;  %s636_s4 = inlined_call_operand.vmem [shape: f32[2,1], index: 4, kind: input, shape index: {}]   ;;  %s637_s5 = inlined_call_operand.hbm [shape: f32[2,256], index: 5, kind: output, shape index: {}]  }
   0x1   :  { %v29_v0 = vld [vmem:[%s634_s2 + $0x18] sm:$0xff]  ;;  %v24_v1 = vld [vmem:[%s633_s1 + $0x10] sm:$0xff]  ;;  %449 = vset.pattern.permute.xlu0 %v494_v2  ;;  %446 = vset.pattern.permute.xlu1 %v495_v3 }
   0x2   :  { %94 = vperm.xlu1 %446, %v29_v0   ;;  %114 = vperm.xlu0 %449, %v24_v1  }
   0x3   :  { %10 = vsyncpa [#allocation3], 0  ;;  %v25_v4 = vld [vmem:[%s633_s1 + $0x18] sm:$0xff]  ;;  %v28_v5 = vld [vmem:[%s634_s2 + $0x10] sm:$0xff]  ;;  %v496_v7 = vmov 2   ;;  %v497_v10 = vmov 3   ;;  %v51_v14 = vlaneseq }
   0x4   :  { %v23_v6 = vld [vmem:[%s633_s1 + $0x8] sm:$0xff]  ;;  %v22_v9 = vld [vmem:[%s633_s1] sm:$0xff]  ;;  %v498_v12 = vmov 0.0   ;;  %vm270_vm0 = vcmask 261120  }
   0x5   :  { %v27_v8 = vld [vmem:[%s634_s2 + $0x8] sm:$0xff]  ;;  %v26_v11 = vld [vmem:[%s634_s2] sm:$0xff]  ;;  %338 = vmatprep.mubr.f32.mxu0 %v498_v12  ;;  %v561_v17 = vshrl.u32 %v51_v14, 7  ;;  %vm398_vm3 = vcmp.lt.s32.totalorder %v51_v14, 256 }
   0x6   :  { %447 = vset.pattern.permute.xlu1 %v494_v2  ;;  %450 = vset.pattern.permute.xlu0 %v495_v3  ;;  %v264_v13 = vld [vmem:[%s636_s4] sm:$0x3] }
   0x7   :  { %118 = vperm.xlu1 %447, %v25_v4   ;;  %47 = vperm.xlu0 %450, %v25_v4   ;;  %v53_v20 = vsub.s32 0, %v561_v17  ;;  %v57_v21 = vsub.s32 4, %v561_v17  ;;  %v21_v22 = vld [vmem:[%s632_s0] sm:$0xff]  ;;  %v123_v27 = vsub.s32 1, %v561_v17  ;;  %v127_v28 = vsub.s32 5, %v561_v17 }
   0x8   :  { %v173_v29 = vsub.s32 2, %v561_v17  ;;  %v177_v30 = vsub.s32 6, %v561_v17  ;;  %v223_v35 = vsub.s32 3, %v561_v17  ;;  %v227_v36 = vsub.s32 7, %v561_v17 }
   0x9   :  { %v54_v24 = vrot.slane %v21_v22, %v53_v20  ;;  %v58_v25 = vrot.slane %v21_v22, %v57_v21  ;;  %v124_v37 = vrot.slane %v21_v22, %v123_v27  ;;  %v128_v38 = vrot.slane %v21_v22, %v127_v28 }
   0xa   :  { %v174_v39 = vrot.slane %v21_v22, %v173_v29  ;;  %v178_v40 = vrot.slane %v21_v22, %v177_v30  ;;  %v224_v44 = vrot.slane %v21_v22, %v223_v35  ;;  %v228_v45 = vrot.slane %v21_v22, %v227_v36 }
   0xb   :  { %448 = vset.pattern.permute.xlu1 %v495_v3  ;;  %42 = vperm.xlu0 %450, %v24_v1   ;;  %v572_v32 = vrot.slane %v54_v24, %v53_v20  ;;  %v574_v33 = vrot.slane %v58_v25, %v53_v20  ;;  %v580_v46 = vrot.slane %v124_v37, %v123_v27 }
   0xc   :  { %89 = vperm.xlu1 %448, %v28_v5   ;;  %v582_v47 = vrot.slane %v128_v38, %v123_v27  ;;  %v584_v48 = vrot.slane %v174_v39, %v173_v29  ;;  %v586_v49 = vrot.slane %v178_v40, %v173_v29  ;;  %v588_v54 = vrot.slane %v224_v44, %v223_v35 }
   0xd   :  { %v590_v55 = vrot.slane %v228_v45, %v223_v35 }
   0xf   :  { %37 = vperm.xlu0 %450, %v23_v6  }
  0x10   :  { %451 = vset.pattern.permute.xlu1 %v496_v7 }
  0x11   :  { %168 = vperm.xlu1 %451, %v25_v4  }
  0x13   :  { %84 = vperm.xlu0 %450, %v27_v8  }
  0x15   :  { %452 = vset.pattern.permute.xlu1 %v495_v3 }
  0x16   :  { %32 = vperm.xlu1 %452, %v22_v9  }
  0x17   :  { %457 = vset.pattern.permute.xlu0 %v496_v7 }
  0x18   :  { %160 = vperm.xlu0 %457, %v23_v6  }
  0x1a   :  { %453 = vset.pattern.permute.xlu1 %v494_v2 }
  0x1b   :  { %110 = vperm.xlu1 %453, %v23_v6  }
  0x1c   :  { %458 = vset.pattern.permute.xlu0 %v497_v10 }
  0x1d   :  { %218 = vperm.xlu0 %458, %v25_v4  }
  0x1f   :  { %454 = vset.pattern.permute.xlu1 %v496_v7 }
  0x20   :  { %164 = vperm.xlu1 %454, %v24_v1  }
  0x21   :  { %210 = vperm.xlu0 %458, %v23_v6  }
  0x24   :  { %455 = vset.pattern.permute.xlu1 %v495_v3 }
  0x25   :  { %79 = vperm.xlu1 %455, %v26_v11   ;;  %463 = vset.pattern.permute.xlu0 %v495_v3 }
  0x29   :  { %456 = vset.pattern.permute.xlu1 %v494_v2 }
  0x2a   :  { %106 = vperm.xlu1 %456, %v22_v9  }
  0x2e   :  { %459 = vset.pattern.permute.xlu1 %v497_v10 }
  0x2f   :  { %214 = vperm.xlu1 %459, %v24_v1  }
  0x33   :  { %460 = vset.pattern.permute.xlu1 %v496_v7 }
  0x34   :  { %156 = vperm.xlu1 %460, %v22_v9  }
  0x38   :  { %461 = vset.pattern.permute.xlu1 %v497_v10 }
  0x39   :  { %206 = vperm.xlu1 %461, %v22_v9  }
  0x3d   :  { %462 = vset.pattern.permute.xlu1 %v495_v3 }
  0x3e   :  { %267 = vperm.xlu1 %462, %v264_v13  }
  0x7d   :  { %v95_v15 = vpop.permute.xlu1 %94  ;;  %v558_v16 = vpop.permute.xlu0 %114 }
  0x7e   :  { %v143_v21 = vmul.f32 %v580_v46, %v558_v16  ;;  %v144_v22 = vmul.f32 %v582_v47, %v558_v16 }
  0x82   :  { %v119_v18 = vpop.permute.xlu1 %118  ;;  %v48_v19 = vpop.permute.xlu0 %47 }
  0x83   :  { %v75_v42 = vmul.f32 %v572_v32, %v48_v19  ;;  %v76_v43 = vmul.f32 %v574_v33, %v48_v19  ;;  %v145_v56 = vmul.f32 %v580_v46, %v119_v18  ;;  %v146_v57 = vmul.f32 %v582_v47, %v119_v18 }
  0x85   :  { %v103_v51 = vadd.f32 %v95_v15, %v75_v42  ;;  %v104_v52 = vadd.f32 %v95_v15, %v76_v43 }
  0x86   :  { %v43_v23 = vpop.permute.xlu0 %42 }
  0x87   :  { %v90_v26 = vpop.permute.xlu1 %89  ;;  %v153_v61 = vadd.f32 %v145_v56, %v103_v51  ;;  %v154_v62 = vadd.f32 %v146_v57, %v104_v52  ;;  %v73_v12 = vmul.f32 %v572_v32, %v43_v23  ;;  %v74_v13 = vmul.f32 %v574_v33, %v43_v23 }
  0x89   :  { %v101_v24 = vadd.f32 %v90_v26, %v73_v12  ;;  %v102_v25 = vadd.f32 %v90_v26, %v74_v13 }
  0x8a   :  { %v38_v31 = vpop.permute.xlu0 %37 }
  0x8b   :  { %v72_v9 = vmul.f32 %v574_v33, %v38_v31  ;;  %v71_v10 = vmul.f32 %v572_v32, %v38_v31  ;;  %v151_v37 = vadd.f32 %v143_v21, %v101_v24  ;;  %v152_v38 = vadd.f32 %v144_v22, %v102_v25 }
  0x8c   :  { %v169_v34 = vpop.permute.xlu1 %168 }
  0x8d   :  { %v195_v58 = vmul.f32 %v584_v48, %v169_v34  ;;  %v196_v59 = vmul.f32 %v586_v49, %v169_v34 }
  0x8e   :  { %v85_v41 = vpop.permute.xlu0 %84 }
  0x8f   :  { %v203_v0 = vadd.f32 %v195_v58, %v153_v61  ;;  %v204_v3 = vadd.f32 %v196_v59, %v154_v62  ;;  %v100_v15 = vadd.f32 %v85_v41, %v72_v9  ;;  %v99_v19 = vadd.f32 %v85_v41, %v71_v10 }
  0x91   :  { %v33_v50 = vpop.permute.xlu1 %32 }
  0x92   :  { %v70_v56 = vmul.f32 %v574_v33, %v33_v50 }
  0x93   :  { %v161_v53 = vpop.permute.xlu0 %160 }
  0x94   :  { %v192_v29 = vmul.f32 %v586_v49, %v161_v53  ;;  %v191_v34 = vmul.f32 %v584_v48, %v161_v53  ;;  %v69_v53 = vmul.f32 %v572_v32, %v33_v50 }
  0x96   :  { %v111_v60 = vpop.permute.xlu1 %110 }
  0x97   :  { %v142_v18 = vmul.f32 %v582_v47, %v111_v60  ;;  %v141_v20 = vmul.f32 %v580_v46, %v111_v60 }
  0x98   :  { %v219_v63 = vpop.permute.xlu0 %218 }
  0x99   :  { %v245_v1 = vmul.f32 %v588_v54, %v219_v63  ;;  %v246_v2 = vmul.f32 %v590_v55, %v219_v63  ;;  %v150_v30 = vadd.f32 %v142_v18, %v100_v15  ;;  %v149_v35 = vadd.f32 %v141_v20, %v99_v19 }
  0x9b   :  { %v165_v4 = vpop.permute.xlu1 %164  ;;  %v254_v5 = vadd.f32 %v246_v2, %v204_v3  ;;  %v253_v6 = vadd.f32 %v245_v1, %v203_v0  ;;  %v200_v39 = vadd.f32 %v192_v29, %v150_v30  ;;  %v199_v44 = vadd.f32 %v191_v34, %v149_v35 }
  0x9c   :  { %v211_v27 = vpop.permute.xlu0 %210  ;;  %v193_v23 = vmul.f32 %v584_v48, %v165_v4  ;;  %v194_v31 = vmul.f32 %v586_v49, %v165_v4 }
  0x9d   :  { %v262_v7 = vmax.f32 %v254_v5, 0.0  ;;  %v261_v8 = vmax.f32 %v253_v6, 0.0  ;;  %v242_v36 = vmul.f32 %v590_v55, %v211_v27  ;;  %v241_v16 = vmul.f32 %v588_v54, %v211_v27 }
  0x9e   :  { %v201_v40 = vadd.f32 %v193_v23, %v151_v37  ;;  %v202_v41 = vadd.f32 %v194_v31, %v152_v38 }
  0x9f   :  { %298 = vmatprep.subr.mxu0 %v262_v7  ;;  %v250_v45 = vadd.f32 %v242_v36, %v200_v39  ;;  %v249_v57 = vadd.f32 %v241_v16, %v199_v44  ;;  %v499_v36 = vmov 1966171168  }
  0xa0   :  { %v80_v11 = vpop.permute.xlu1 %79  ;;  %299 = vmatpush1.msra.mxu0 %v261_v8  ;;  %v381_v37 = vunpack.c.l.s4 %v499_v36 }
  0xa1   :  { %v258_v63 = vmax.f32 %v250_v45, 0.0  ;;  %v97_v0 = vadd.f32 %v80_v11, %v69_v53  ;;  %v98_v1 = vadd.f32 %v80_v11, %v70_v56  ;;  %v257_v4 = vmax.f32 %v249_v57, 0.0 }
  0xa5   :  { %v107_v28 = vpop.permute.xlu1 %106 }
  0xa6   :  { %v139_v58 = vmul.f32 %v580_v46, %v107_v28  ;;  %v140_v59 = vmul.f32 %v582_v47, %v107_v28 }
  0xa8   :  { %v147_v32 = vadd.f32 %v139_v58, %v97_v0  ;;  %v148_v33 = vadd.f32 %v140_v59, %v98_v1 }
  0xaa   :  { %v215_v26 = vpop.permute.xlu1 %214 }
  0xab   :  { %v243_v42 = vmul.f32 %v588_v54, %v215_v26  ;;  %v244_v43 = vmul.f32 %v590_v55, %v215_v26 }
  0xad   :  { %v251_v51 = vadd.f32 %v243_v42, %v201_v40  ;;  %v252_v52 = vadd.f32 %v244_v43, %v202_v41  ;;  %v382_v40 = vunpack.c.0.s8 %v381_v37 }
  0xaf   :  { %v157_v60 = vpop.permute.xlu1 %156  ;;  %v260_v61 = vmax.f32 %v252_v52, 0.0  ;;  %v259_v62 = vmax.f32 %v251_v51, 0.0  ;;  %v385_v44 = vsub.s32 %v382_v40, %v561_v17 }
  0xb0   :  { %v189_v2 = vmul.f32 %v584_v48, %v157_v60  ;;  %v190_v3 = vmul.f32 %v586_v49, %v157_v60  ;;  %v263_v49 = vld [vmem:[%s635_s3] sm:$0x3]  ;;  %s500_s3 = smov [#allocation2]  }
  0xb1   :  { %300 = vmatprep.subr.mxu0 %v260_v61  ;;  %s430_s11 = sshll.u32 %s500_s3, 4  ;;  %s431_s11 = int_to_ptr.vmem [resolvable:$true] %s430_s11 }
  0xb2   :  { %301 = vmatpush1.msra.mxu0 %v259_v62  ;;  %v197_v46 = vadd.f32 %v189_v2, %v147_v32  ;;  %v198_v47 = vadd.f32 %v190_v3, %v148_v33  ;;  %s472_s12 = scalar_lea.vmem %s431_s11, 64  ;;  %p477_p1 = scmp.lt.s32.totalorder %s431_s11, %s431_s11 }
  0xb3   :  { %302 = vmatprep.subr.mxu0 %v258_v63  ;;  %p473_p0 = scmp.ne.s32.totalorder %s431_s11, %s472_s12  ;;  %p478_p2 = scmp.lt.s32.totalorder %s472_s12, %s472_s12 }
  0xb4   :  { %v207_v50 = vpop.permute.xlu1 %206  ;;  %303 = vmatpush1.msra.mxu0 %v257_v4 }
  0xb5   :  { %v239_v5 = vmul.f32 %v588_v54, %v207_v50  ;;  %v240_v6 = vmul.f32 %v590_v55, %v207_v50  ;;  %p479_p3 = por %p478_p2, %p477_p1 }
  0xb7   :  { %v247_v7 = vadd.f32 %v239_v5, %v197_v46  ;;  %v248_v8 = vadd.f32 %v240_v6, %v198_v47  ;;  %p480_p4 = pnand %p479_p3, %p473_p0 }
  0xb9   :  { %v256_v9 = vmax.f32 %v248_v8, 0.0  ;;  %v255_v48 = vmax.f32 %v247_v7, 0.0  ;;  %v268_v10 = vpop.permute.xlu1 %267 }
  0xbb   :  { %304 = vmatprep.subr.mxu0 %v256_v9 }
  0xbc   :  { %305 = vmatpush1.msra.mxu0 %v255_v48 }
  0xbd   :  { %438 = vmatmul.mubr.msk.f32.vlgmr.msra.gmra.mxu0 %vm270_vm0, %v263_v49 }
 0x17d   :  { %v340_v11 = vpop.f32.mrf.mxu0 }
 0x17e   :  { %v341_v12 = vadd.f32 %v340_v11, %v268_v10 }
 0x17f   :  { %v342_v13 = vpop.f32.mrf.mxu0 }
 0x180   :  { %v347_v15 = vrot.slane %v341_v12, 7  ;;  %v343_v54 = vadd.f32 %v342_v13, %v268_v10 }
 0x182   :  { %v351_v18 = vsub.f32 %v341_v12, %v347_v15  ;;  %v348_v55 = vrot.slane %v343_v54, 7 }
 0x184   :  { %v353_v19 = vand.u32 2147483647, %v351_v18  ;;  %v352_v20 = vsub.f32 %v343_v54, %v348_v55  ;;  %vm373_vm1 = vcmp.ge.f32.partialorder %v351_v18, 0.0 }
 0x186   :  { %v355_v21 = vsub.f32 0.0, %v353_v19  ;;  %v354_v22 = vand.u32 2147483647, %v352_v20  ;;  %vm374_vm2 = vcmp.ge.f32.partialorder %v352_v20, 0.0 }
 0x188   :  { %v357_v24 = vmul.f32 1.442695, %v355_v21  ;;  %v356_v25 = vsub.f32 0.0, %v354_v22 }
 0x18a   :  { %464 = vpow2.f32 %v357_v24  ;;  %v359_v27 = vmul.f32 1.442695, %v356_v25 }
 0x18c   :  { %466 = vpow2.f32 %v359_v27 }
 0x197   :  { %v465_v28 = vpop.eup %464 }
 0x198   :  { %v361_v29 = vadd.f32 1.0, %v465_v28 }
 0x199   :  { %v467_v30 = vpop.eup %466 }
 0x19a   :  { %468 = vrcp.f32 %v361_v29  ;;  %v362_v23 = vadd.f32 1.0, %v467_v30 }
 0x19c   :  { %470 = vrcp.f32 %v362_v23 }
 0x1a7   :  { %v469_v31 = vpop.eup %468 }
 0x1a8   :  { %v365_v34 = vmul.f32 %v469_v31, %v361_v29 }
 0x1a9   :  { %v471_v35 = vpop.eup %470 }
 0x1aa   :  { %v367_v38 = vsub.f32 2.0, %v365_v34  ;;  %v366_v39 = vmul.f32 %v471_v35, %v362_v23 }
 0x1ac   :  { %v369_v16 = vmul.f32 %v469_v31, %v367_v38  ;;  %v368_v26 = vsub.f32 2.0, %v366_v39 }
 0x1ae   :  { %v371_v41 = vmul.f32 %v465_v28, %v369_v16  ;;  %v370_v42 = vmul.f32 %v471_v35, %v368_v26 }
 0x1b0   :  { %v372_v43 = vmul.f32 %v467_v30, %v370_v42  ;;  %v375_v45 = vsel %vm373_vm1, %v371_v41, %v369_v16  ;;  %v401_v51 = vsel %vm373_vm1, %v369_v16, %v371_v41 }
 0x1b2   :  { %v376_v52 = vsel %vm374_vm2, %v372_v43, %v370_v42  ;;  %v402_v53 = vsel %vm374_vm2, %v370_v42, %v372_v43 }
 0x1b3   :  { %v379_v56 = vcombine.low %v375_v45, %v376_v52  ;;  %v405_v57 = vcombine.low %v401_v51, %v402_v53 }
 0x1b5   :  { %v386_v58 = vrot.slane %v379_v56, %v385_v44  ;;  %v412_v59 = vrot.slane %v405_v57, %v385_v44 }
 0x1b7   :  { %v387_v60 = vcombine.high %v386_v58, %v386_v58  ;;  %v413_v61 = vcombine.high %v412_v59, %v412_v59 }
 0x1b9   :  { %v394_v62 = vrot.slane %v387_v60, %v385_v44  ;;  %v420_v63 = vrot.slane %v413_v61, %v385_v44 }
 0x1bb   :  { %400 = vst.msk [vmem:[#allocation2] ss:$2 sm:$0x3] %vm398_vm3, %v394_v62  ;;  %423 = vst.msk [vmem:[#allocation2 + $0x1] ss:$2 sm:$0x3] %vm398_vm3, %v420_v63 }
 0x1bc   :  { %483 = shalt.err (!%p480_p4)
}
 0x1bd   :  { %433 = dma.vmem_to_hbm [thread:$0]  %s431_s11, 64, %s637_s5, [#allocation3]  }
 0x1be   :  { %492 = dma.done.wait [#allocation3], 64  }
 0x1bf   :  { %493 = vsyncadd [#allocation3], 4294967232 }
 0x1c0   :  { %437 = vsyncpa [#allocation3], 1 }

</bundles_post_ra>
